<compile_context>
chip_gen: v7x
topology: tpu7x:2x2x1
jax: 0.10.0
libtpu: 0.0.40
codegen_flags: <defaults>
</compile_context>

<pallas_src>
import jax
import jax.numpy as jnp
from jax.experimental import pallas as pl
from jax.experimental.pallas import tpu as pltpu


def _round_up(x, m):
    return ((x + m - 1) // m) * m


_NEG_BIG = -1e30  # padded output logits -> exp() == 0, never the row max


# ---------------------------------------------------------------------------
# One-time parameter packing (hoists transposes / reshapes / casts off the hot path)
# ---------------------------------------------------------------------------
def pack_params(params, in_dim, hidden_dim, out_dim):
    """Pack parameters into
       * wpack : bf16 (k_pad + 2*lane, lane) weight slab  [W1^T | W2^T | W3^T]
       * bpack : f32  (8, lane)  row0=b1 row1=b2 row2=b3(-1e30 pad)
                                 row3=W1^T[emb0] row4=W1^T[emb1]
    """
    d_in = in_dim + 2
    k_pad = _round_up(d_in, 16)  # 16: keeps bf16 sublane-packed slices aligned
    lane = max(_round_up(hidden_dim, 128), _round_up(out_dim, 128))
    rows_w = k_pad + 2 * lane

    w1t = jnp.asarray(params["h1_w"], jnp.float32).T      # (d_in, H)
    w2t = jnp.asarray(params["h2_w"], jnp.float32).T      # (H, H)
    w3t = jnp.asarray(params["out_w"], jnp.float32).T     # (H, out_dim)

    # f32 pack: biases + embedding weight rows (precision-critical, tiny)
    bpack = jnp.zeros((8, lane), jnp.float32)
    bpack = bpack.at[0, :hidden_dim].set(jnp.asarray(params["h1_b"], jnp.float32))
    bpack = bpack.at[1, :hidden_dim].set(jnp.asarray(params["h2_b"], jnp.float32))
    bpack = bpack.at[2, :].set(jnp.float32(_NEG_BIG))
    bpack = bpack.at[2, :out_dim].set(jnp.asarray(params["out_b"], jnp.float32))
    bpack = bpack.at[3, :hidden_dim].set(w1t[in_dim, :])       # embedding input 0
    bpack = bpack.at[4, :hidden_dim].set(w1t[in_dim + 1, :])   # embedding input 1

    # bf16 weight slab (the two embedding rows of W1 are carried in bpack, so
    # they are left zero here — their x columns are zero-padded anyway)
    wpack = jnp.zeros((rows_w, lane), jnp.float32)
    wpack = wpack.at[0:in_dim, :hidden_dim].set(w1t[:in_dim, :])
    wpack = wpack.at[k_pad:k_pad + hidden_dim, :hidden_dim].set(w2t)
    wpack = wpack.at[k_pad + lane:k_pad + lane + hidden_dim, :out_dim].set(w3t)
    wpack = wpack.astype(jnp.bfloat16)

    cfg = dict(in_dim=in_dim, hidden_dim=hidden_dim, out_dim=out_dim,
               k_pad=k_pad, lane=lane, rows_w=rows_w)
    return wpack, bpack, cfg


# ---------------------------------------------------------------------------
# Kernel
# ---------------------------------------------------------------------------
def _make_kernel(cfg):
    k_pad = cfg["k_pad"]
    lane = cfg["lane"]

    def kernel(emb_ref, x_ref, b_ref, w_ref, o_ref):
        # emb_ref : SMEM (2,) f32              -- bayesian embedding scalars
        # x_ref   : VMEM (TILE_B, k_pad) f32   -- zero-padded input rows
        # b_ref   : VMEM (8, lane) f32         -- biases + embedding weight rows
        # w_ref   : VMEM (rows_w, lane) bf16   -- packed weight slab (resident)
        # o_ref   : VMEM (TILE_B, lane) f32    -- lane-dense padded log-probs
        x = x_ref[...].astype(jnp.bfloat16)    # MXU-native operand

        # In-kernel "concat": fold the 2 embedding scalars into the first-layer
        # bias (the corresponding x columns are zero-padded, so this is exact).
        e0 = emb_ref[0]
        e1 = emb_ref[1]
        b1 = b_ref[0:1, :] + e0 * b_ref[3:4, :] + e1 * b_ref[4:5, :]
        b2 = b_ref[1:2, :]
        b3 = b_ref[2:3, :]

        w1 = w_ref[0:k_pad, :]
        w2 = w_ref[k_pad:k_pad + lane, :]
        w3 = w_ref[k_pad + lane:k_pad + 2 * lane, :]

        h = jnp.maximum(
            jnp.dot(x, w1, preferred_element_type=jnp.float32) + b1, 0.0)
        h = jnp.maximum(
            jnp.dot(h.astype(jnp.bfloat16), w2,
                    preferred_element_type=jnp.float32) + b2, 0.0)
        logits = jnp.dot(h.astype(jnp.bfloat16), w3,
                         preferred_element_type=jnp.float32) + b3

        # numerically stable log_softmax; padded columns carry -1e30 so they
        # contribute 0 to the sum and never win the max
        m = jnp.max(logits, axis=-1, keepdims=True)
        z = logits - m
        lse = jnp.log(jnp.sum(jnp.exp(z), axis=-1, keepdims=True))
        o_ref[...] = z - lse

    return kernel


# ---------------------------------------------------------------------------
# Wrapper
# ---------------------------------------------------------------------------
def classifier_mlp_forward(x, embedding, wpack, bpack, cfg):
    """x: (in_dim,) or (B, in_dim); embedding: (1, 2); wpack/bpack/cfg from pack_params()."""
    in_dim = cfg["in_dim"]
    out_dim = cfg["out_dim"]
    k_pad = cfg["k_pad"]
    lane = cfg["lane"]
    rows_w = cfg["rows_w"]

    squeeze = (x.ndim == 1)
    xb = x[None, :] if squeeze else x
    B = xb.shape[0]

    # Batch tiling: large tiles amortise per-step pipeline overhead; cap at
    # 2048 rows so per-tile VMEM (x + out double-buffered + f32 intermediates
    # + resident params) stays < ~8 MB -> fits every generation's default
    # scoped VMEM, including v5e's 16 MiB.  If the whole batch would fit in a
    # single tile, split it into >=2 parallel steps so both v7x TCs get work.
    tile_b = min(2048, _round_up(max(B, 1), 8))
    if B > 8 and _round_up(B, tile_b) == tile_b:
        tile_b = _round_up((B + 1) // 2, 8)
    b_pad = _round_up(B, tile_b)

    # single pad op: rows -> b_pad, features -> k_pad (embedding cols stay 0;
    # their contribution is added in-kernel via the bias fold)
    xp = jnp.pad(xb.astype(jnp.float32),
                 ((0, b_pad - B), (0, k_pad - in_dim)))
    emb = embedding.reshape(2).astype(jnp.float32)
    kernel = _make_kernel(cfg)

    cost = pl.CostEstimate(
        flops=2 * b_pad * lane * (k_pad + 2 * lane),
        transcendentals=b_pad * lane + b_pad,        # exp / element + log / row
        bytes_accessed=(4 * b_pad * k_pad            # x in  (f32)
                        + 2 * rows_w * lane          # bf16 weight slab
                        + 4 * 8 * lane               # f32 bias pack
                        + 4 * b_pad * lane),         # out   (f32)
    )

    def build(single_buffer_resident):
        def resident(shape):
            if single_buffer_resident:
                # constant index_map -> no need for double buffering
                return pl.BlockSpec(shape, lambda i: (0, 0),
                                    pipeline_mode=pl.Buffered(1))
            return pl.BlockSpec(shape, lambda i: (0, 0))

        return pl.pallas_call(
            kernel,
            out_shape=jax.ShapeDtypeStruct((b_pad, lane), jnp.float32),
            grid=(b_pad // tile_b,),
            in_specs=[
                pl.BlockSpec(memory_space=pltpu.MemorySpace.SMEM),   # embedding
                pl.BlockSpec((tile_b, k_pad), lambda i: (i, 0)),     # x tile
                resident((8, lane)),                                 # f32 biases
                resident((rows_w, lane)),                            # bf16 weights
            ],
            out_specs=pl.BlockSpec((tile_b, lane), lambda i: (i, 0)),
            compiler_params=pltpu.CompilerParams(
                dimension_semantics=("parallel",)),
            cost_estimate=cost,
        )

    try:
        out = build(True)(emb, xp, bpack, wpack)
    except Exception:
        # Fallback for jax versions without Buffered(1) resident blocks:
        # default double-buffering is still correct (~80 KB extra VMEM).
        out = build(False)(emb, xp, bpack, wpack)

    out = out[:B, :out_dim]
    return out[0] if squeeze else out


# ---------------------------------------------------------------------------
# Deterministic synthetic parameters (shapes match nn.Linear / nn.Parameter)
# ---------------------------------------------------------------------------
def init_params(key, in_dim, hidden_dim, out_dim):
    ks = jax.random.split(key, 7)
    d_in = in_dim + 2
    scale = lambda fan_in: 1.0 / jnp.sqrt(jnp.float32(fan_in))
    return {
        "h1_w": jax.random.normal(ks[0], (hidden_dim, d_in), jnp.float32) * scale(d_in),
        "h1_b": jax.random.normal(ks[1], (hidden_dim,), jnp.float32) * scale(d_in),
        "h2_w": jax.random.normal(ks[2], (hidden_dim, hidden_dim), jnp.float32) * scale(hidden_dim),
        "h2_b": jax.random.normal(ks[3], (hidden_dim,), jnp.float32) * scale(hidden_dim),
        "out_w": jax.random.normal(ks[4], (out_dim, hidden_dim), jnp.float32) * scale(hidden_dim),
        "out_b": jax.random.normal(ks[5], (out_dim,), jnp.float32) * scale(hidden_dim),
        "embedding": jax.random.normal(ks[6], (1, 2), jnp.float32),  # nn.Parameter(randn(1, 2))
    }


def _reference(xb, params):
    emb = params["embedding"].reshape(2)
    xc = jnp.concatenate([xb, jnp.broadcast_to(emb, (xb.shape[0], 2))], axis=1)
    h = jax.nn.relu(xc @ params["h1_w"].T + params["h1_b"])
    h = jax.nn.relu(h @ params["h2_w"].T + params["h2_b"])
    return jax.nn.log_softmax(h @ params["out_w"].T + params["out_b"], axis=-1)


if __name__ == "__main__":
    in_dim, hidden_dim, out_dim = 30, 32, 8
    batch = 4

    key = jax.random.PRNGKey(0)
    pkey, xkey, xkey2 = jax.random.split(key, 3)
    params = init_params(pkey, in_dim, hidden_dim, out_dim)
    wpack, bpack, cfg = pack_params(params, in_dim, hidden_dim, out_dim)  # hoisted: once

    xb = jax.random.normal(xkey, (batch, in_dim), jnp.float32)
    ref_b = _reference(xb, params)

    # batched path (single-tile grid)
    out_b = jax.block_until_ready(
        classifier_mlp_forward(xb, params["embedding"], wpack, bpack, cfg))
    assert out_b.shape == (batch, out_dim)
    # bf16 matmul operands -> relaxed tolerance vs f32 reference
    assert jnp.allclose(out_b, ref_b, atol=3e-2), (out_b, ref_b)

    # single 1-D sample path (matches the PyTorch module's forward exactly)
    out_1 = jax.block_until_ready(
        classifier_mlp_forward(xb[0], params["embedding"], wpack, bpack, cfg))
    assert out_1.shape == (out_dim,)
    assert jnp.allclose(out_1, ref_b[0], atol=3e-2), (out_1, ref_b[0])

    # multi-step grid path (>=2 parallel tiles, ragged final tile)
    xb2 = jax.random.normal(xkey2, (200, in_dim), jnp.float32)
    out_2 = jax.block_until_ready(
        classifier_mlp_forward(xb2, params["embedding"], wpack, bpack, cfg))
    ref_2 = _reference(xb2, params)
    assert out_2.shape == (200, out_dim)
    assert jnp.allclose(out_2, ref_2, atol=3e-2)

    print("KERNEL_OK")
</pallas_src>

<mosaic_0001>
module attributes {stable_mosaic.version = 11 : i64} {
  func.func @kernel(%arg0: i32, %arg1: memref<2xf32, #tpu.memory_space<smem>>, %arg2: memref<8x32xf32, #tpu.memory_space<vmem>>, %arg3: memref<8x128xf32, #tpu.memory_space<vmem>>, %arg4: memref<288x128xbf16, #tpu.memory_space<vmem>>, %arg5: memref<8x128xf32, #tpu.memory_space<vmem>>) attributes {dimension_semantics = [#tpu.dimension_semantics<parallel>], iteration_bounds = array<i64: 1>, scalar_prefetch = 0 : i64, scratch_operands = 0 : i64, tpu.core_type = #tpu.core_type<tc>, window_params = [{transform_indices = @transform_0, window_bounds = array<i64: 2>}, {transform_indices = @transform_1, window_bounds = array<i64: 8, 32>}, {pipeline_mode = #tpu.pipeline_mode<synchronous>, transform_indices = @transform_2, window_bounds = array<i64: 8, 128>}, {pipeline_mode = #tpu.pipeline_mode<synchronous>, transform_indices = @transform_3, window_bounds = array<i64: 288, 128>}, {transform_indices = @transform_4, window_bounds = array<i64: 8, 128>}]} {
    %c0 = arith.constant 0 : index
    %c0_0 = arith.constant 0 : index
    %0 = vector.load %arg2[%c0, %c0_0] : memref<8x32xf32, #tpu.memory_space<vmem>>, vector<8x32xf32>
    %1 = arith.truncf %0 : vector<8x32xf32> to vector<8x32xbf16>
    %c0_1 = arith.constant 0 : index
    %2 = memref.load %arg1[%c0_1] : memref<2xf32, #tpu.memory_space<smem>>
    %c1 = arith.constant 1 : index
    %3 = memref.load %arg1[%c1] : memref<2xf32, #tpu.memory_space<smem>>
    %c0_2 = arith.constant 0 : index
    %c0_3 = arith.constant 0 : index
    %4 = vector.load %arg3[%c0_2, %c0_3] : memref<8x128xf32, #tpu.memory_space<vmem>>, vector<1x128xf32>
    %c3 = arith.constant 3 : index
    %c0_4 = arith.constant 0 : index
    %5 = vector.load %arg3[%c3, %c0_4] : memref<8x128xf32, #tpu.memory_space<vmem>>, vector<1x128xf32>
    %6 = vector.broadcast %2 : f32 to vector<1x128xf32>
    %7 = arith.mulf %6, %5 : vector<1x128xf32>
    %8 = arith.addf %4, %7 : vector<1x128xf32>
    %c4 = arith.constant 4 : index
    %c0_5 = arith.constant 0 : index
    %9 = vector.load %arg3[%c4, %c0_5] : memref<8x128xf32, #tpu.memory_space<vmem>>, vector<1x128xf32>
    %10 = vector.broadcast %3 : f32 to vector<1x128xf32>
    %11 = arith.mulf %10, %9 : vector<1x128xf32>
    %12 = arith.addf %8, %11 : vector<1x128xf32>
    %c1_6 = arith.constant 1 : index
    %c0_7 = arith.constant 0 : index
    %13 = vector.load %arg3[%c1_6, %c0_7] : memref<8x128xf32, #tpu.memory_space<vmem>>, vector<1x128xf32>
    %c2 = arith.constant 2 : index
    %c0_8 = arith.constant 0 : index
    %14 = vector.load %arg3[%c2, %c0_8] : memref<8x128xf32, #tpu.memory_space<vmem>>, vector<1x128xf32>
    %c0_9 = arith.constant 0 : index
    %c0_10 = arith.constant 0 : index
    %15 = vector.load %arg4[%c0_9, %c0_10] : memref<288x128xbf16, #tpu.memory_space<vmem>>, vector<32x128xbf16>
    %c32 = arith.constant 32 : index
    %c0_11 = arith.constant 0 : index
    %16 = vector.load %arg4[%c32, %c0_11] : memref<288x128xbf16, #tpu.memory_space<vmem>>, vector<128x128xbf16>
    %c160 = arith.constant 160 : index
    %c0_12 = arith.constant 0 : index
    %17 = vector.load %arg4[%c160, %c0_12] : memref<288x128xbf16, #tpu.memory_space<vmem>>, vector<128x128xbf16>
    %cst = arith.constant dense<0.000000e+00> : vector<8x128xf32>
    %18 = tpu.matmul %1, %15, %cst {dimension_numbers = #tpu.dot_dimension_numbers<[1], [0], [0], [1], [0, 0, 1, 1], [], []>} : vector<8x32xbf16>, vector<32x128xbf16>, vector<8x128xf32> -> vector<8x128xf32>
    %19 = vector.broadcast %12 : vector<1x128xf32> to vector<8x128xf32>
    %20 = arith.addf %18, %19 : vector<8x128xf32>
    %cst_13 = arith.constant 0.000000e+00 : f32
    %21 = vector.broadcast %cst_13 : f32 to vector<8x128xf32>
    %22 = arith.maximumf %20, %21 : vector<8x128xf32>
    %23 = arith.truncf %22 : vector<8x128xf32> to vector<8x128xbf16>
    %cst_14 = arith.constant dense<0.000000e+00> : vector<8x128xf32>
    %24 = tpu.matmul %23, %16, %cst_14 {dimension_numbers = #tpu.dot_dimension_numbers<[1], [0], [0], [1], [0, 0, 1, 1], [], []>} : vector<8x128xbf16>, vector<128x128xbf16>, vector<8x128xf32> -> vector<8x128xf32>
    %25 = vector.broadcast %13 : vector<1x128xf32> to vector<8x128xf32>
    %26 = arith.addf %24, %25 : vector<8x128xf32>
    %cst_15 = arith.constant 0.000000e+00 : f32
    %27 = vector.broadcast %cst_15 : f32 to vector<8x128xf32>
    %28 = arith.maximumf %26, %27 : vector<8x128xf32>
    %29 = arith.truncf %28 : vector<8x128xf32> to vector<8x128xbf16>
    %cst_16 = arith.constant dense<0.000000e+00> : vector<8x128xf32>
    %30 = tpu.matmul %29, %17, %cst_16 {dimension_numbers = #tpu.dot_dimension_numbers<[1], [0], [0], [1], [0, 0, 1, 1], [], []>} : vector<8x128xbf16>, vector<128x128xbf16>, vector<8x128xf32> -> vector<8x128xf32>
    %31 = vector.broadcast %14 : vector<1x128xf32> to vector<8x128xf32>
    %32 = arith.addf %30, %31 : vector<8x128xf32>
    %cst_17 = arith.constant dense<0xFF800000> : vector<8xf32>
    %33 = vector.multi_reduction <maximumf>, %32, %cst_17 [1] : vector<8x128xf32> to vector<8xf32>
    %34 = vector.shape_cast %33 : vector<8xf32> to vector<8x1xf32>
    %35 = vector.broadcast %34 : vector<8x1xf32> to vector<8x128xf32>
    %36 = arith.subf %32, %35 : vector<8x128xf32>
    %37 = math.exp %36 : vector<8x128xf32>
    %cst_18 = arith.constant dense<0.000000e+00> : vector<8xf32>
    %38 = vector.multi_reduction <add>, %37, %cst_18 [1] : vector<8x128xf32> to vector<8xf32>
    %39 = vector.shape_cast %38 : vector<8xf32> to vector<8x1xf32>
    %40 = math.log %39 : vector<8x1xf32>
    %41 = vector.broadcast %40 : vector<8x1xf32> to vector<8x128xf32>
    %42 = arith.subf %36, %41 : vector<8x128xf32>
    %c0_19 = arith.constant 0 : index
    %c0_20 = arith.constant 0 : index
    %43 = vector.load %arg5[%c0_19, %c0_20] : memref<8x128xf32, #tpu.memory_space<vmem>>, vector<8x128xf32>
    tpu.vector_store %arg5[%c0_19, %c0_20], %42 {strides = array<i32>} : memref<8x128xf32, #tpu.memory_space<vmem>>, vector<8x128xf32>,
    return
  }
  func.func @transform_0(%arg0: i32) -> i32 {
    %c0_i32 = arith.constant 0 : i32
    %c0_i32_0 = arith.constant 0 : i32
    return %c0_i32 : i32
  }
  func.func @transform_1(%arg0: i32) -> (i32, i32) {
    %c0_i32 = arith.constant 0 : i32
    %c0_i32_0 = arith.constant 0 : i32
    return %arg0, %c0_i32 : i32, i32
  }
  func.func @transform_2(%arg0: i32) -> (i32, i32) {
    %c0_i32 = arith.constant 0 : i32
    %c0_i32_0 = arith.constant 0 : i32
    %c0_i32_1 = arith.constant 0 : i32
    return %c0_i32, %c0_i32_0 : i32, i32
  }
  func.func @transform_3(%arg0: i32) -> (i32, i32) {
    %c0_i32 = arith.constant 0 : i32
    %c0_i32_0 = arith.constant 0 : i32
    %c0_i32_1 = arith.constant 0 : i32
    return %c0_i32, %c0_i32_0 : i32, i32
  }
  func.func @transform_4(%arg0: i32) -> (i32, i32) {
    %c0_i32 = arith.constant 0 : i32
    %c0_i32_0 = arith.constant 0 : i32
    return %arg0, %c0_i32 : i32, i32
  }
}

module attributes {stable_mosaic.version = 11 : i64} {
  func.func @kernel(%arg0: i32, %arg1: memref<2xf32, #tpu.memory_space<smem>>, %arg2: memref<8x32xf32, #tpu.memory_space<vmem>>, %arg3: memref<8x128xf32, #tpu.memory_space<vmem>>, %arg4: memref<288x128xbf16, #tpu.memory_space<vmem>>, %arg5: memref<8x128xf32, #tpu.memory_space<vmem>>) attributes {dimension_semantics = [#tpu.dimension_semantics<parallel>], iteration_bounds = array<i64: 1>, scalar_prefetch = 0 : i64, scratch_operands = 0 : i64, tpu.core_type = #tpu.core_type<tc>, window_params = [{transform_indices = @transform_0, window_bounds = array<i64: 2>}, {transform_indices = @transform_1, window_bounds = array<i64: 8, 32>}, {pipeline_mode = #tpu.pipeline_mode<synchronous>, transform_indices = @transform_2, window_bounds = array<i64: 8, 128>}, {pipeline_mode = #tpu.pipeline_mode<synchronous>, transform_indices = @transform_3, window_bounds = array<i64: 288, 128>}, {transform_indices = @transform_4, window_bounds = array<i64: 8, 128>}]} {
    %c0 = arith.constant 0 : index
    %c0_0 = arith.constant 0 : index
    %0 = vector.load %arg2[%c0, %c0_0] : memref<8x32xf32, #tpu.memory_space<vmem>>, vector<8x32xf32>
    %1 = arith.truncf %0 : vector<8x32xf32> to vector<8x32xbf16>
    %c0_1 = arith.constant 0 : index
    %2 = memref.load %arg1[%c0_1] : memref<2xf32, #tpu.memory_space<smem>>
    %c1 = arith.constant 1 : index
    %3 = memref.load %arg1[%c1] : memref<2xf32, #tpu.memory_space<smem>>
    %c0_2 = arith.constant 0 : index
    %c0_3 = arith.constant 0 : index
    %4 = vector.load %arg3[%c0_2, %c0_3] : memref<8x128xf32, #tpu.memory_space<vmem>>, vector<1x128xf32>
    %c3 = arith.constant 3 : index
    %c0_4 = arith.constant 0 : index
    %5 = vector.load %arg3[%c3, %c0_4] : memref<8x128xf32, #tpu.memory_space<vmem>>, vector<1x128xf32>
    %6 = vector.broadcast %2 : f32 to vector<1x128xf32>
    %7 = arith.mulf %6, %5 : vector<1x128xf32>
    %8 = arith.addf %4, %7 : vector<1x128xf32>
    %c4 = arith.constant 4 : index
    %c0_5 = arith.constant 0 : index
    %9 = vector.load %arg3[%c4, %c0_5] : memref<8x128xf32, #tpu.memory_space<vmem>>, vector<1x128xf32>
    %10 = vector.broadcast %3 : f32 to vector<1x128xf32>
    %11 = arith.mulf %10, %9 : vector<1x128xf32>
    %12 = arith.addf %8, %11 : vector<1x128xf32>
    %c1_6 = arith.constant 1 : index
    %c0_7 = arith.constant 0 : index
    %13 = vector.load %arg3[%c1_6, %c0_7] : memref<8x128xf32, #tpu.memory_space<vmem>>, vector<1x128xf32>
    %c2 = arith.constant 2 : index
    %c0_8 = arith.constant 0 : index
    %14 = vector.load %arg3[%c2, %c0_8] : memref<8x128xf32, #tpu.memory_space<vmem>>, vector<1x128xf32>
    %c0_9 = arith.constant 0 : index
    %c0_10 = arith.constant 0 : index
    %15 = vector.load %arg4[%c0_9, %c0_10] : memref<288x128xbf16, #tpu.memory_space<vmem>>, vector<32x128xbf16>
    %c32 = arith.constant 32 : index
    %c0_11 = arith.constant 0 : index
    %16 = vector.load %arg4[%c32, %c0_11] : memref<288x128xbf16, #tpu.memory_space<vmem>>, vector<128x128xbf16>
    %c160 = arith.constant 160 : index
    %c0_12 = arith.constant 0 : index
    %17 = vector.load %arg4[%c160, %c0_12] : memref<288x128xbf16, #tpu.memory_space<vmem>>, vector<128x128xbf16>
    %cst = arith.constant dense<0.000000e+00> : vector<8x128xf32>
    %18 = tpu.matmul %1, %15, %cst {dimension_numbers = #tpu.dot_dimension_numbers<[1], [0], [0], [1], [0, 0, 1, 1], [], []>} : vector<8x32xbf16>, vector<32x128xbf16>, vector<8x128xf32> -> vector<8x128xf32>
    %19 = vector.broadcast %12 : vector<1x128xf32> to vector<8x128xf32>
    %20 = arith.addf %18, %19 : vector<8x128xf32>
    %cst_13 = arith.constant 0.000000e+00 : f32
    %21 = vector.broadcast %cst_13 : f32 to vector<8x128xf32>
    %22 = arith.maximumf %20, %21 : vector<8x128xf32>
    %23 = arith.truncf %22 : vector<8x128xf32> to vector<8x128xbf16>
    %cst_14 = arith.constant dense<0.000000e+00> : vector<8x128xf32>
    %24 = tpu.matmul %23, %16, %cst_14 {dimension_numbers = #tpu.dot_dimension_numbers<[1], [0], [0], [1], [0, 0, 1, 1], [], []>} : vector<8x128xbf16>, vector<128x128xbf16>, vector<8x128xf32> -> vector<8x128xf32>
    %25 = vector.broadcast %13 : vector<1x128xf32> to vector<8x128xf32>
    %26 = arith.addf %24, %25 : vector<8x128xf32>
    %cst_15 = arith.constant 0.000000e+00 : f32
    %27 = vector.broadcast %cst_15 : f32 to vector<8x128xf32>
    %28 = arith.maximumf %26, %27 : vector<8x128xf32>
    %29 = arith.truncf %28 : vector<8x128xf32> to vector<8x128xbf16>
    %cst_16 = arith.constant dense<0.000000e+00> : vector<8x128xf32>
    %30 = tpu.matmul %29, %17, %cst_16 {dimension_numbers = #tpu.dot_dimension_numbers<[1], [0], [0], [1], [0, 0, 1, 1], [], []>} : vector<8x128xbf16>, vector<128x128xbf16>, vector<8x128xf32> -> vector<8x128xf32>
    %31 = vector.broadcast %14 : vector<1x128xf32> to vector<8x128xf32>
    %32 = arith.addf %30, %31 : vector<8x128xf32>
    %cst_17 = arith.constant dense<0xFF800000> : vector<8xf32>
    %33 = vector.multi_reduction <maximumf>, %32, %cst_17 [1] : vector<8x128xf32> to vector<8xf32>
    %34 = vector.shape_cast %33 : vector<8xf32> to vector<8x1xf32>
    %35 = vector.broadcast %34 : vector<8x1xf32> to vector<8x128xf32>
    %36 = arith.subf %32, %35 : vector<8x128xf32>
    %37 = math.exp %36 : vector<8x128xf32>
    %cst_18 = arith.constant dense<0.000000e+00> : vector<8xf32>
    %38 = vector.multi_reduction <add>, %37, %cst_18 [1] : vector<8x128xf32> to vector<8xf32>
    %39 = vector.shape_cast %38 : vector<8xf32> to vector<8x1xf32>
    %40 = math.log %39 : vector<8x1xf32>
    %41 = vector.broadcast %40 : vector<8x1xf32> to vector<8x128xf32>
    %42 = arith.subf %36, %41 : vector<8x128xf32>
    %c0_19 = arith.constant 0 : index
    %c0_20 = arith.constant 0 : index
    %43 = vector.load %arg5[%c0_19, %c0_20] : memref<8x128xf32, #tpu.memory_space<vmem>>, vector<8x128xf32>
    tpu.vector_store %arg5[%c0_19, %c0_20], %42 {strides = array<i32>} : memref<8x128xf32, #tpu.memory_space<vmem>>, vector<8x128xf32>,
    return
  }
  func.func @transform_0(%arg0: i32) -> i32 {
    %c0_i32 = arith.constant 0 : i32
    %c0_i32_0 = arith.constant 0 : i32
    return %c0_i32 : i32
  }
  func.func @transform_1(%arg0: i32) -> (i32, i32) {
    %c0_i32 = arith.constant 0 : i32
    %c0_i32_0 = arith.constant 0 : i32
    return %arg0, %c0_i32 : i32, i32
  }
  func.func @transform_2(%arg0: i32) -> (i32, i32) {
    %c0_i32 = arith.constant 0 : i32
    %c0_i32_0 = arith.constant 0 : i32
    %c0_i32_1 = arith.constant 0 : i32
    return %c0_i32, %c0_i32_0 : i32, i32
  }
  func.func @transform_3(%arg0: i32) -> (i32, i32) {
    %c0_i32 = arith.constant 0 : i32
    %c0_i32_0 = arith.constant 0 : i32
    %c0_i32_1 = arith.constant 0 : i32
    return %c0_i32, %c0_i32_0 : i32, i32
  }
  func.func @transform_4(%arg0: i32) -> (i32, i32) {
    %c0_i32 = arith.constant 0 : i32
    %c0_i32_0 = arith.constant 0 : i32
    return %arg0, %c0_i32 : i32, i32
  }
}

</mosaic_0001>

<bundles_post_ra>
// kernel: tpu_custom_call.1
= control target key start
LH: loop header
LB: loop body
LE: loop exit
PB: predicated region body
PF: predicated region fallthrough
CT: control target
= control target key end

     0   :  { %9 = vsyncpa [#allocation5], 0  ;;  %s740_s0 = inlined_call_operand.hbm [shape: f32[2], index: 0, kind: input, shape index: {}]   ;;  %s741_s1 = inlined_call_operand.hbm [shape: f32[8,32], index: 1, kind: input, shape index: {}]   ;;  %s742_s2 = inlined_call_operand.hbm [shape: f32[8,128], index: 2, kind: input, shape index: {}]   ;;  %s743_s3 = inlined_call_operand.hbm [shape: bf16[288,128], index: 3, kind: input, shape index: {}]   ;;  %s744_s4 = inlined_call_operand.hbm [shape: f32[8,128], index: 4, kind: output, shape index: {}]  }
   0x1   :  { %10 = vsyncpa [#allocation3], 0 }
   0x2   :  { %11 = vsyncpa [#allocation8], 0 }
   0x3   :  { %12 = vsyncpa [#allocation4], 0  ;;  %s622_s15 = smov [#allocation7]   ;;  %s623_s17 = smov [#allocation6]  }
   0x4   :  { %s37_s16 = sshll.u32 %s622_s15, 4  ;;  %s27_s18 = sshll.u32 %s623_s17, 4  ;;  %s38_s16 = int_to_ptr.vmem [resolvable:$true] %s37_s16  ;;  %s28_s18 = int_to_ptr.vmem [resolvable:$true] %s27_s18 }
   0x5   :  { %s516_s21 = scalar_lea.hbm %s742_s2, 128 }
   0x6   :  { %p517_p0 = scmp.ne.s32.totalorder %s742_s2, %s516_s21  ;;  %p520_p1 = scmp.lt.u32.totalorder %s516_s21, %s742_s2 }
   0x8   :  { %p522_p2 = pnand %p520_p1, %p517_p0 }
   0xa   :  { %525 = shalt.err (!%p522_p2)
}
   0xb   :  { %s526_s26 = scalar_lea.vmem %s38_s16, 128  ;;  %p531_p4 = scmp.lt.s32.totalorder %s38_s16, %s38_s16 }
   0xc   :  { %p527_p3 = scmp.ne.s32.totalorder %s38_s16, %s526_s26  ;;  %p532_p5 = scmp.lt.s32.totalorder %s526_s26, %s526_s26 }
   0xe   :  { %p533_p6 = por %p532_p5, %p531_p4 }
  0x10   :  { %p534_p7 = pnand %p533_p6, %p527_p3 }
  0x12   :  { %537 = shalt.err (!%p534_p7)
}
  0x13   :  { %40 = dma.hbm_to_vmem [thread:$0]  %s742_s2, 128, %s38_s16, [#allocation8]  }
  0x14   :  { %s538_s5 = scalar_lea.hbm %s740_s0, 16 }
  0x15   :  { %p539_p8 = scmp.ne.s32.totalorder %s740_s0, %s538_s5  ;;  %p542_p9 = scmp.lt.u32.totalorder %s538_s5, %s740_s0 }
  0x17   :  { %p544_p10 = pnand %p542_p9, %p539_p8 }
  0x19   :  { %547 = shalt.err (!%p544_p10)
}
  0x1a   :  { %s624_s10 = smov [#allocation2]   ;;  %s548_s14 = scalar_lea.hbm %s741_s1, 128 }
  0x1b   :  { %20 = dma.hbm_to_smem %s740_s0, 16, %s624_s10, [#allocation5]  }
  0x1c   :  { %p549_p11 = scmp.ne.s32.totalorder %s741_s1, %s548_s14  ;;  %p552_p12 = scmp.lt.u32.totalorder %s548_s14, %s741_s1 }
  0x1e   :  { %p554_p13 = pnand %p552_p12, %p549_p11 }
  0x20   :  { %557 = shalt.err (!%p554_p13)
}
  0x21   :  { %s558_s20 = scalar_lea.vmem %s28_s18, 128  ;;  %p563_p1 = scmp.lt.s32.totalorder %s28_s18, %s28_s18 }
  0x22   :  { %p559_p0 = scmp.ne.s32.totalorder %s28_s18, %s558_s20  ;;  %p564_p2 = scmp.lt.s32.totalorder %s558_s20, %s558_s20 }
  0x24   :  { %p565_p3 = por %p564_p2, %p563_p1 }
  0x26   :  { %p566_p4 = pnand %p565_p3, %p559_p0 }
  0x28   :  { %569 = shalt.err (!%p566_p4)
}
  0x29   :  { %30 = dma.hbm_to_vmem [thread:$0]  %s741_s1, 128, %s28_s18, [#allocation3]  }
  0x2a   :  { %s625_s22 = smov [#allocation9]   ;;  %s570_s26 = scalar_lea.hbm %s743_s3, 2304 }
  0x2b   :  { %s46_s23 = sshll.u32 %s625_s22, 4  ;;  %p571_p5 = scmp.ne.s32.totalorder %s743_s3, %s570_s26  ;;  %s47_s23 = int_to_ptr.vmem [resolvable:$true] %s46_s23 }
  0x2c   :  { %p574_p6 = scmp.lt.u32.totalorder %s570_s26, %s743_s3 }
  0x2e   :  { %p576_p7 = pnand %p574_p6, %p571_p5 }
  0x30   :  { %579 = shalt.err (!%p576_p7)
}
  0x31   :  { %s580_s5 = scalar_lea.vmem %s47_s23, 2304  ;;  %p585_p9 = scmp.lt.s32.totalorder %s47_s23, %s47_s23 }
  0x32   :  { %p581_p8 = scmp.ne.s32.totalorder %s47_s23, %s580_s5  ;;  %p586_p10 = scmp.lt.s32.totalorder %s580_s5, %s580_s5 }
  0x34   :  { %p587_p11 = por %p586_p10, %p585_p9 }
  0x36   :  { %p588_p12 = pnand %p587_p11, %p581_p8 }
  0x38   :  { %591 = shalt.err (!%p588_p12)
}
  0x39   :  { %s626_s1 = smov 64   ;;  %s627_s18 = smov 4  }
  0x3a   :  { %52 = dma.hbm_to_vmem [thread:$0]  %s743_s3, 2304, %s47_s23, [#allocation8], %s626_s1, %s626_s1, %s627_s18  }
  0x3b   :  { %614 = dma.done.wait [#allocation5], 16  }
  0x3c   :  { %615 = vsyncadd [#allocation5], 4294967280 }
  0x3d   :  { %616 = dma.done.wait [#allocation3], 128  }
  0x3e   :  { %617 = vsyncadd [#allocation3], 4294967168 }
  0x3f   :  { %618 = dma.done.wait [#allocation8], 2432  }
  0x40   :  { %619 = vsyncadd [#allocation8], 4294964864 }
  0x41   :  { %65 = sfence }
  0x42   :  { %v494_v0 = vld [vmem:[#allocation9] sm:$0xff]   ;;  %v628_v1 = vmov 0.0   ;;  %v495_v2 = vld [vmem:[#allocation9 + $0x8] sm:$0xff]   ;;  %vm629_vm0 = vmmov 0   ;;  %v67_v3 = vld [vmem:[#allocation6] sm:$0xff]  ;;  %vm134_vm1 = vcmask 261120   ;;  %v118_v22 = vlaneseq }
  0x43   :  { %437 = vmatprep.subr.bf16.mxu0 %v628_v1  ;;  %445 = vmatprep.subr.bf16.mxu1 %v628_v1  ;;  %v496_v4 = vld [vmem:[#allocation9 + $0x10] sm:$0xff]   ;;  %v68_v5 = vpack.c.bf16 %v67_v3, %v67_v3  ;;  %v497_v6 = vld [vmem:[#allocation9 + $0x18] sm:$0xff]   ;;  %v498_v7 = vld [vmem:[#allocation9 + $0x20] sm:$0xff]   ;;  %s69_s3 = sld [smem:[#allocation2]]  ;;  %s394_s8 = sld [smem:[#allocation2 + $0x1]] }
  0x44   :  { %438 = vmatpush3.bf16.msra.mxu0 %v494_v0  ;;  %441 = vmatprep.mubr.msk.bf16.mxu0 %vm629_vm0, %v628_v1  ;;  %v499_v8 = vld [vmem:[#allocation9 + $0x28] sm:$0xff]   ;;  %v500_v9 = vld [vmem:[#allocation9 + $0x30] sm:$0xff]   ;;  %v501_v10 = vld [vmem:[#allocation9 + $0x38] sm:$0xff]   ;;  %v119_v28 = vshrl.u32 %v118_v22, 7  ;;  %s630_s9 = smov [#allocation10]  }
  0x45   :  { %439 = vmatprep.subr.bf16.mxu0 %v628_v1  ;;  %461 = vmatprep.mubr.msk.bf16.mxu1 %vm629_vm0, %v628_v1  ;;  %v502_v11 = vld [vmem:[#allocation9 + $0x40] sm:$0xff]   ;;  %v503_v12 = vld [vmem:[#allocation9 + $0x48] sm:$0xff]   ;;  %v504_v13 = vld [vmem:[#allocation9 + $0x50] sm:$0xff]   ;;  %s383_s10 = sshll.u32 %s630_s9, 4  ;;  %s384_s10 = int_to_ptr.vmem [resolvable:$true] %s383_s10 }
  0x46   :  { %446 = vmatpush3.bf16.msra.mxu1 %v496_v4  ;;  %v505_v14 = vld [vmem:[#allocation9 + $0x58] sm:$0xff]   ;;  %v506_v15 = vld [vmem:[#allocation9 + $0x60] sm:$0xff]   ;;  %v507_v16 = vld [vmem:[#allocation9 + $0x68] sm:$0xff]   ;;  %v120_v30 = vsub.s32 0, %v119_v28  ;;  %s592_s11 = scalar_lea.vmem %s384_s10, 128  ;;  %p597_p0 = scmp.lt.s32.totalorder %s384_s10, %s384_s10 }
  0x47   :  { %447 = vmatprep.subr.bf16.mxu1 %v628_v1  ;;  %v508_v17 = vld [vmem:[#allocation9 + $0x70] sm:$0xff]   ;;  %v509_v18 = vld [vmem:[#allocation9 + $0x78] sm:$0xff]   ;;  %v510_v39 = vld [vmem:[#allocation9 + $0x80] sm:$0xff]   ;;  %p593_p13 = scmp.ne.s32.totalorder %s384_s10, %s592_s11  ;;  %p598_p1 = scmp.lt.s32.totalorder %s592_s11, %s592_s11 }
  0x48   :  { %440 = vmatpush3.bf16.msra.mxu0 %v495_v2  ;;  %v72_v19 = vld [vmem:[#allocation7 + $0x3] sm:$0x1]  ;;  %v71_v23 = vld [vmem:[#allocation7] sm:$0x1]  ;;  %v76_v24 = vld [vmem:[#allocation7 + $0x4] sm:$0x1] }
  0x49   :  { %465 = vmatprep.subr.bf16.mxu0 %v628_v1  ;;  %v73_v20 = vstv %s69_s3  ;;  %v77_v25 = vstv %s394_s8  ;;  %v511_v40 = vld [vmem:[#allocation9 + $0x88] sm:$0xff]   ;;  %v398_v41 = vld [vmem:[#allocation7 + $0x1] ss:$0 sm:$0xff]  ;;  %v407_v49 = vld [vmem:[#allocation7 + $0x2] ss:$0 sm:$0xff]  ;;  %p599_p2 = por %p598_p1, %p597_p0 }
  0x4a   :  { %448 = vmatpush3.bf16.msra.mxu1 %v497_v6  ;;  %v74_v21 = vmul.f32 %v73_v20, %v72_v19  ;;  %v78_v27 = vmul.f32 %v77_v25, %v76_v24 }
  0x4b   :  { %442 = vmatmul.mubr.msk.bf16.vlgmr.msra.gmra.mrb[0].mxu0 %vm134_vm1, %v68_v5  ;;  %449 = vmatprep.subr.bf16.mxu1 %v628_v1  ;;  %p600_p3 = pnand %p599_p2, %p593_p13 }
  0x4c   :  { %481 = vmatprep.mubr.msk.bf16.mxu0 %vm629_vm0, %v628_v1  ;;  %466 = vmatpush3.bf16.msra.mxu0 %v504_v13  ;;  %v75_v26 = vadd.f32 %v74_v21, %v71_v23 }
  0x4d   :  { %467 = vmatprep.subr.bf16.mxu0 %v628_v1 }
  0x4e   :  { %450 = vmatpush3.bf16.msra.mxu1 %v498_v7  ;;  %v79_v29 = vadd.f32 %v78_v27, %v75_v26 }
  0x4f   :  { %451 = vmatprep.subr.bf16.mxu1 %v628_v1 }
  0x50   :  { %468 = vmatpush3.bf16.msra.mxu0 %v505_v14  ;;  %v121_v31 = vrot.slane %v79_v29, %v120_v30 }
  0x51   :  { %469 = vmatprep.subr.bf16.mxu0 %v628_v1 }
  0x52   :  { %452 = vmatpush3.bf16.msra.mxu1 %v499_v8 }
  0x53   :  { %453 = vmatprep.subr.bf16.mxu1 %v628_v1 }
  0x54   :  { %470 = vmatpush3.bf16.msra.mxu0 %v506_v15 }
  0x55   :  { %471 = vmatprep.subr.bf16.mxu0 %v628_v1 }
  0x56   :  { %454 = vmatpush3.bf16.msra.mxu1 %v500_v9 }
  0x57   :  { %455 = vmatprep.subr.bf16.mxu1 %v628_v1 }
  0x58   :  { %472 = vmatpush3.bf16.msra.mxu0 %v507_v16 }
  0x59   :  { %473 = vmatprep.subr.bf16.mxu0 %v628_v1 }
  0x5a   :  { %456 = vmatpush3.bf16.msra.mxu1 %v501_v10 }
  0x5b   :  { %457 = vmatprep.subr.bf16.mxu1 %v628_v1 }
  0x5c   :  { %474 = vmatpush3.bf16.msra.mxu0 %v508_v17 }
  0x5d   :  { %475 = vmatprep.subr.bf16.mxu0 %v628_v1 }
  0x5e   :  { %458 = vmatpush3.bf16.msra.mxu1 %v502_v11 }
  0x5f   :  { %459 = vmatprep.subr.bf16.mxu1 %v628_v1 }
  0x60   :  { %476 = vmatpush3.bf16.msra.mxu0 %v509_v18 }
  0x61   :  { %477 = vmatprep.subr.bf16.mxu0 %v628_v1 }
  0x62   :  { %460 = vmatpush3.bf16.msra.mxu1 %v503_v12 }
  0x64   :  { %478 = vmatpush3.bf16.msra.mxu0 %v510_v39 }
  0x65   :  { %479 = vmatprep.subr.bf16.mxu0 %v628_v1 }
  0x68   :  { %480 = vmatpush3.bf16.msra.mxu0 %v511_v40 }
 0x11e   :  { %v172_v32 = vpop.f32.mrb[0].mxu0 }
 0x11f   :  { %v173_v33 = vadd.f32 %v172_v32, %v121_v31  ;;  %v443_v34 = vpop.f32.mrb[1].mxu0 }
 0x120   :  { %v175_v35 = vpop.f32.mrb[2].mxu0 }
 0x121   :  { %v178_v36 = vmax.f32 %v173_v33, 0.0  ;;  %v444_v37 = vpop.f32.mrb[3].mxu0 }
 0x123   :  { %v179_v38 = vpack.c.bf16 %v178_v36, %v178_v36 }
 0x125   :  { %462 = vmatmul.mubr.bf16.vlgmr.msra.gmra.mrb[0].mxu1 %v179_v38 }
 0x1f8   :  { %v266_v42 = vpop.f32.mrb[0].mxu1 }
 0x1f9   :  { %v267_v43 = vadd.f32 %v398_v41, %v266_v42  ;;  %v463_v44 = vpop.f32.mrb[1].mxu1 }
 0x1fa   :  { %v269_v45 = vpop.f32.mrb[2].mxu1 }
 0x1fb   :  { %v272_v46 = vmax.f32 %v267_v43, 0.0  ;;  %v464_v47 = vpop.f32.mrb[3].mxu1 }
 0x1fd   :  { %v273_v48 = vpack.c.bf16 %v272_v46, %v272_v46 }
 0x1ff   :  { %482 = vmatmul.mubr.bf16.vlgmr.msra.gmra.mrb[4].mxu0 %v273_v48 }
 0x2d2   :  { %v360_v50 = vpop.f32.mrb[4].mxu0 }
 0x2d3   :  { %v361_v51 = vadd.f32 %v407_v49, %v360_v50  ;;  %v483_v52 = vpop.f32.mrb[5].mxu0 }
 0x2d4   :  { %v363_v53 = vpop.f32.mrb[6].mxu0 }
 0x2d5   :  { %366 = vmax.xlane.f32.xlu0 %v361_v51  ;;  %v484_v54 = vpop.f32.mrb[7].mxu0 }
 0x362   :  { %v367_v55 = vpop.xlane.xlu0 %366 }
 0x363   :  { %v368_v56 = vsub.f32 %v361_v51, %v367_v55 }
 0x365   :  { %v369_v57 = vmul.f32 1.442695, %v368_v56 }
 0x367   :  { %512 = vpow2.f32 %v369_v57 }
 0x371   :  { %v513_v58 = vpop.eup %512 }
 0x372   :  { %371 = vadd.xlane.f32.xlu0 %v513_v58 }
 0x3ff   :  { %v372_v59 = vpop.xlane.xlu0 %371 }
 0x400   :  { %514 = vlog2.f32 %v372_v59 }
 0x40a   :  { %v515_v60 = vpop.eup %514 }
 0x40b   :  { %v374_v61 = vmul.f32 0.6931472, %v515_v60 }
 0x40d   :  { %v375_v62 = vsub.f32 %v368_v56, %v374_v61 }
 0x40f   :  { %376 = vst [vmem:[#allocation10] sm:$0xff] %v375_v62 }
 0x410   :  { %603 = shalt.err (!%p600_p3)
}
 0x411   :  { %s604_s13 = scalar_lea.hbm %s744_s4, 128 }
 0x412   :  { %p605_p4 = scmp.ne.s32.totalorder %s744_s4, %s604_s13  ;;  %p608_p5 = scmp.lt.u32.totalorder %s604_s13, %s744_s4 }
 0x414   :  { %p610_p6 = pnand %p608_p5, %p605_p4 }
 0x416   :  { %613 = shalt.err (!%p610_p6)
}
 0x417   :  { %386 = dma.vmem_to_hbm [thread:$0]  %s384_s10, 128, %s744_s4, [#allocation4]  }
 0x418   :  { %620 = dma.done.wait [#allocation4], 128  }
 0x419   :  { %621 = vsyncadd [#allocation4], 4294967168 }
 0x41a   :  { %390 = vsyncpa [#allocation3], 1 }
 0x41b   :  { %391 = vsyncpa [#allocation8], 1 }
 0x41c   :  { %392 = vsyncpa [#allocation4], 1 }
 0x41d   :  { %393 = vsyncpa [#allocation5], 1 }

// kernel: tpu_custom_call.1
= control target key start
LH: loop header
LB: loop body
LE: loop exit
PB: predicated region body
PF: predicated region fallthrough
CT: control target
= control target key end

     0   :  { %9 = vsyncpa [#allocation5], 0  ;;  %s740_s0 = inlined_call_operand.hbm [shape: f32[2], index: 0, kind: input, shape index: {}]   ;;  %s741_s1 = inlined_call_operand.hbm [shape: f32[8,32], index: 1, kind: input, shape index: {}]   ;;  %s742_s2 = inlined_call_operand.hbm [shape: f32[8,128], index: 2, kind: input, shape index: {}]   ;;  %s743_s3 = inlined_call_operand.hbm [shape: bf16[288,128], index: 3, kind: input, shape index: {}]   ;;  %s744_s4 = inlined_call_operand.hbm [shape: f32[8,128], index: 4, kind: output, shape index: {}]  }
   0x1   :  { %10 = vsyncpa [#allocation3], 0 }
   0x2   :  { %11 = vsyncpa [#allocation8], 0 }
   0x3   :  { %12 = vsyncpa [#allocation4], 0  ;;  %s622_s15 = smov [#allocation7]   ;;  %s623_s17 = smov [#allocation6]  }
   0x4   :  { %s37_s16 = sshll.u32 %s622_s15, 4  ;;  %s27_s18 = sshll.u32 %s623_s17, 4  ;;  %s38_s16 = int_to_ptr.vmem [resolvable:$true] %s37_s16  ;;  %s28_s18 = int_to_ptr.vmem [resolvable:$true] %s27_s18 }
   0x5   :  { %s516_s21 = scalar_lea.hbm %s742_s2, 128 }
   0x6   :  { %p517_p0 = scmp.ne.s32.totalorder %s742_s2, %s516_s21  ;;  %p520_p1 = scmp.lt.u32.totalorder %s516_s21, %s742_s2 }
   0x8   :  { %p522_p2 = pnand %p520_p1, %p517_p0 }
   0xa   :  { %525 = shalt.err (!%p522_p2)
}
   0xb   :  { %s526_s26 = scalar_lea.vmem %s38_s16, 128  ;;  %p531_p4 = scmp.lt.s32.totalorder %s38_s16, %s38_s16 }
   0xc   :  { %p527_p3 = scmp.ne.s32.totalorder %s38_s16, %s526_s26  ;;  %p532_p5 = scmp.lt.s32.totalorder %s526_s26, %s526_s26 }
   0xe   :  { %p533_p6 = por %p532_p5, %p531_p4 }
  0x10   :  { %p534_p7 = pnand %p533_p6, %p527_p3 }
  0x12   :  { %537 = shalt.err (!%p534_p7)
}
  0x13   :  { %40 = dma.hbm_to_vmem [thread:$0]  %s742_s2, 128, %s38_s16, [#allocation8]  }
  0x14   :  { %s538_s5 = scalar_lea.hbm %s740_s0, 16 }
  0x15   :  { %p539_p8 = scmp.ne.s32.totalorder %s740_s0, %s538_s5  ;;  %p542_p9 = scmp.lt.u32.totalorder %s538_s5, %s740_s0 }
  0x17   :  { %p544_p10 = pnand %p542_p9, %p539_p8 }
  0x19   :  { %547 = shalt.err (!%p544_p10)
}
  0x1a   :  { %s624_s10 = smov [#allocation2]   ;;  %s548_s14 = scalar_lea.hbm %s741_s1, 128 }
  0x1b   :  { %20 = dma.hbm_to_smem %s740_s0, 16, %s624_s10, [#allocation5]  }
  0x1c   :  { %p549_p11 = scmp.ne.s32.totalorder %s741_s1, %s548_s14  ;;  %p552_p12 = scmp.lt.u32.totalorder %s548_s14, %s741_s1 }
  0x1e   :  { %p554_p13 = pnand %p552_p12, %p549_p11 }
  0x20   :  { %557 = shalt.err (!%p554_p13)
}
  0x21   :  { %s558_s20 = scalar_lea.vmem %s28_s18, 128  ;;  %p563_p1 = scmp.lt.s32.totalorder %s28_s18, %s28_s18 }
  0x22   :  { %p559_p0 = scmp.ne.s32.totalorder %s28_s18, %s558_s20  ;;  %p564_p2 = scmp.lt.s32.totalorder %s558_s20, %s558_s20 }
  0x24   :  { %p565_p3 = por %p564_p2, %p563_p1 }
  0x26   :  { %p566_p4 = pnand %p565_p3, %p559_p0 }
  0x28   :  { %569 = shalt.err (!%p566_p4)
}
  0x29   :  { %30 = dma.hbm_to_vmem [thread:$0]  %s741_s1, 128, %s28_s18, [#allocation3]  }
  0x2a   :  { %s625_s22 = smov [#allocation9]   ;;  %s570_s26 = scalar_lea.hbm %s743_s3, 2304 }
  0x2b   :  { %s46_s23 = sshll.u32 %s625_s22, 4  ;;  %p571_p5 = scmp.ne.s32.totalorder %s743_s3, %s570_s26  ;;  %s47_s23 = int_to_ptr.vmem [resolvable:$true] %s46_s23 }
  0x2c   :  { %p574_p6 = scmp.lt.u32.totalorder %s570_s26, %s743_s3 }
  0x2e   :  { %p576_p7 = pnand %p574_p6, %p571_p5 }
  0x30   :  { %579 = shalt.err (!%p576_p7)
}
  0x31   :  { %s580_s5 = scalar_lea.vmem %s47_s23, 2304  ;;  %p585_p9 = scmp.lt.s32.totalorder %s47_s23, %s47_s23 }
  0x32   :  { %p581_p8 = scmp.ne.s32.totalorder %s47_s23, %s580_s5  ;;  %p586_p10 = scmp.lt.s32.totalorder %s580_s5, %s580_s5 }
  0x34   :  { %p587_p11 = por %p586_p10, %p585_p9 }
  0x36   :  { %p588_p12 = pnand %p587_p11, %p581_p8 }
  0x38   :  { %591 = shalt.err (!%p588_p12)
}
  0x39   :  { %s626_s1 = smov 64   ;;  %s627_s18 = smov 4  }
  0x3a   :  { %52 = dma.hbm_to_vmem [thread:$0]  %s743_s3, 2304, %s47_s23, [#allocation8], %s626_s1, %s626_s1, %s627_s18  }
  0x3b   :  { %614 = dma.done.wait [#allocation5], 16  }
  0x3c   :  { %615 = vsyncadd [#allocation5], 4294967280 }
  0x3d   :  { %616 = dma.done.wait [#allocation3], 128  }
  0x3e   :  { %617 = vsyncadd [#allocation3], 4294967168 }
  0x3f   :  { %618 = dma.done.wait [#allocation8], 2432  }
  0x40   :  { %619 = vsyncadd [#allocation8], 4294964864 }
  0x41   :  { %65 = sfence }
  0x42   :  { %v494_v0 = vld [vmem:[#allocation9] sm:$0xff]   ;;  %v628_v1 = vmov 0.0   ;;  %v495_v2 = vld [vmem:[#allocation9 + $0x8] sm:$0xff]   ;;  %vm629_vm0 = vmmov 0   ;;  %v67_v3 = vld [vmem:[#allocation6] sm:$0xff]  ;;  %vm134_vm1 = vcmask 261120   ;;  %v118_v22 = vlaneseq }
  0x43   :  { %437 = vmatprep.subr.bf16.mxu0 %v628_v1  ;;  %445 = vmatprep.subr.bf16.mxu1 %v628_v1  ;;  %v496_v4 = vld [vmem:[#allocation9 + $0x10] sm:$0xff]   ;;  %v68_v5 = vpack.c.bf16 %v67_v3, %v67_v3  ;;  %v497_v6 = vld [vmem:[#allocation9 + $0x18] sm:$0xff]   ;;  %v498_v7 = vld [vmem:[#allocation9 + $0x20] sm:$0xff]   ;;  %s69_s3 = sld [smem:[#allocation2]]  ;;  %s394_s8 = sld [smem:[#allocation2 + $0x1]] }
  0x44   :  { %438 = vmatpush3.bf16.msra.mxu0 %v494_v0  ;;  %441 = vmatprep.mubr.msk.bf16.mxu0 %vm629_vm0, %v628_v1  ;;  %v499_v8 = vld [vmem:[#allocation9 + $0x28] sm:$0xff]   ;;  %v500_v9 = vld [vmem:[#allocation9 + $0x30] sm:$0xff]   ;;  %v501_v10 = vld [vmem:[#allocation9 + $0x38] sm:$0xff]   ;;  %v119_v28 = vshrl.u32 %v118_v22, 7  ;;  %s630_s9 = smov [#allocation10]  }
  0x45   :  { %439 = vmatprep.subr.bf16.mxu0 %v628_v1  ;;  %461 = vmatprep.mubr.msk.bf16.mxu1 %vm629_vm0, %v628_v1  ;;  %v502_v11 = vld [vmem:[#allocation9 + $0x40] sm:$0xff]   ;;  %v503_v12 = vld [vmem:[#allocation9 + $0x48] sm:$0xff]   ;;  %v504_v13 = vld [vmem:[#allocation9 + $0x50] sm:$0xff]   ;;  %s383_s10 = sshll.u32 %s630_s9, 4  ;;  %s384_s10 = int_to_ptr.vmem [resolvable:$true] %s383_s10 }
  0x46   :  { %446 = vmatpush3.bf16.msra.mxu1 %v496_v4  ;;  %v505_v14 = vld [vmem:[#allocation9 + $0x58] sm:$0xff]   ;;  %v506_v15 = vld [vmem:[#allocation9 + $0x60] sm:$0xff]   ;;  %v507_v16 = vld [vmem:[#allocation9 + $0x68] sm:$0xff]   ;;  %v120_v30 = vsub.s32 0, %v119_v28  ;;  %s592_s11 = scalar_lea.vmem %s384_s10, 128  ;;  %p597_p0 = scmp.lt.s32.totalorder %s384_s10, %s384_s10 }
  0x47   :  { %447 = vmatprep.subr.bf16.mxu1 %v628_v1  ;;  %v508_v17 = vld [vmem:[#allocation9 + $0x70] sm:$0xff]   ;;  %v509_v18 = vld [vmem:[#allocation9 + $0x78] sm:$0xff]   ;;  %v510_v39 = vld [vmem:[#allocation9 + $0x80] sm:$0xff]   ;;  %p593_p13 = scmp.ne.s32.totalorder %s384_s10, %s592_s11  ;;  %p598_p1 = scmp.lt.s32.totalorder %s592_s11, %s592_s11 }
  0x48   :  { %440 = vmatpush3.bf16.msra.mxu0 %v495_v2  ;;  %v72_v19 = vld [vmem:[#allocation7 + $0x3] sm:$0x1]  ;;  %v71_v23 = vld [vmem:[#allocation7] sm:$0x1]  ;;  %v76_v24 = vld [vmem:[#allocation7 + $0x4] sm:$0x1] }
  0x49   :  { %465 = vmatprep.subr.bf16.mxu0 %v628_v1  ;;  %v73_v20 = vstv %s69_s3  ;;  %v77_v25 = vstv %s394_s8  ;;  %v511_v40 = vld [vmem:[#allocation9 + $0x88] sm:$0xff]   ;;  %v398_v41 = vld [vmem:[#allocation7 + $0x1] ss:$0 sm:$0xff]  ;;  %v407_v49 = vld [vmem:[#allocation7 + $0x2] ss:$0 sm:$0xff]  ;;  %p599_p2 = por %p598_p1, %p597_p0 }
  0x4a   :  { %448 = vmatpush3.bf16.msra.mxu1 %v497_v6  ;;  %v74_v21 = vmul.f32 %v73_v20, %v72_v19  ;;  %v78_v27 = vmul.f32 %v77_v25, %v76_v24 }
  0x4b   :  { %442 = vmatmul.mubr.msk.bf16.vlgmr.msra.gmra.mrb[0].mxu0 %vm134_vm1, %v68_v5  ;;  %449 = vmatprep.subr.bf16.mxu1 %v628_v1  ;;  %p600_p3 = pnand %p599_p2, %p593_p13 }
  0x4c   :  { %481 = vmatprep.mubr.msk.bf16.mxu0 %vm629_vm0, %v628_v1  ;;  %466 = vmatpush3.bf16.msra.mxu0 %v504_v13  ;;  %v75_v26 = vadd.f32 %v74_v21, %v71_v23 }
  0x4d   :  { %467 = vmatprep.subr.bf16.mxu0 %v628_v1 }
  0x4e   :  { %450 = vmatpush3.bf16.msra.mxu1 %v498_v7  ;;  %v79_v29 = vadd.f32 %v78_v27, %v75_v26 }
  0x4f   :  { %451 = vmatprep.subr.bf16.mxu1 %v628_v1 }
  0x50   :  { %468 = vmatpush3.bf16.msra.mxu0 %v505_v14  ;;  %v121_v31 = vrot.slane %v79_v29, %v120_v30 }
  0x51   :  { %469 = vmatprep.subr.bf16.mxu0 %v628_v1 }
  0x52   :  { %452 = vmatpush3.bf16.msra.mxu1 %v499_v8 }
  0x53   :  { %453 = vmatprep.subr.bf16.mxu1 %v628_v1 }
  0x54   :  { %470 = vmatpush3.bf16.msra.mxu0 %v506_v15 }
  0x55   :  { %471 = vmatprep.subr.bf16.mxu0 %v628_v1 }
  0x56   :  { %454 = vmatpush3.bf16.msra.mxu1 %v500_v9 }
  0x57   :  { %455 = vmatprep.subr.bf16.mxu1 %v628_v1 }
  0x58   :  { %472 = vmatpush3.bf16.msra.mxu0 %v507_v16 }
  0x59   :  { %473 = vmatprep.subr.bf16.mxu0 %v628_v1 }
  0x5a   :  { %456 = vmatpush3.bf16.msra.mxu1 %v501_v10 }
  0x5b   :  { %457 = vmatprep.subr.bf16.mxu1 %v628_v1 }
  0x5c   :  { %474 = vmatpush3.bf16.msra.mxu0 %v508_v17 }
  0x5d   :  { %475 = vmatprep.subr.bf16.mxu0 %v628_v1 }
  0x5e   :  { %458 = vmatpush3.bf16.msra.mxu1 %v502_v11 }
  0x5f   :  { %459 = vmatprep.subr.bf16.mxu1 %v628_v1 }
  0x60   :  { %476 = vmatpush3.bf16.msra.mxu0 %v509_v18 }
  0x61   :  { %477 = vmatprep.subr.bf16.mxu0 %v628_v1 }
  0x62   :  { %460 = vmatpush3.bf16.msra.mxu1 %v503_v12 }
  0x64   :  { %478 = vmatpush3.bf16.msra.mxu0 %v510_v39 }
  0x65   :  { %479 = vmatprep.subr.bf16.mxu0 %v628_v1 }
  0x68   :  { %480 = vmatpush3.bf16.msra.mxu0 %v511_v40 }
 0x11e   :  { %v172_v32 = vpop.f32.mrb[0].mxu0 }
 0x11f   :  { %v173_v33 = vadd.f32 %v172_v32, %v121_v31  ;;  %v443_v34 = vpop.f32.mrb[1].mxu0 }
 0x120   :  { %v175_v35 = vpop.f32.mrb[2].mxu0 }
 0x121   :  { %v178_v36 = vmax.f32 %v173_v33, 0.0  ;;  %v444_v37 = vpop.f32.mrb[3].mxu0 }
 0x123   :  { %v179_v38 = vpack.c.bf16 %v178_v36, %v178_v36 }
 0x125   :  { %462 = vmatmul.mubr.bf16.vlgmr.msra.gmra.mrb[0].mxu1 %v179_v38 }
 0x1f8   :  { %v266_v42 = vpop.f32.mrb[0].mxu1 }
 0x1f9   :  { %v267_v43 = vadd.f32 %v398_v41, %v266_v42  ;;  %v463_v44 = vpop.f32.mrb[1].mxu1 }
 0x1fa   :  { %v269_v45 = vpop.f32.mrb[2].mxu1 }
 0x1fb   :  { %v272_v46 = vmax.f32 %v267_v43, 0.0  ;;  %v464_v47 = vpop.f32.mrb[3].mxu1 }
 0x1fd   :  { %v273_v48 = vpack.c.bf16 %v272_v46, %v272_v46 }
 0x1ff   :  { %482 = vmatmul.mubr.bf16.vlgmr.msra.gmra.mrb[4].mxu0 %v273_v48 }
 0x2d2   :  { %v360_v50 = vpop.f32.mrb[4].mxu0 }
 0x2d3   :  { %v361_v51 = vadd.f32 %v407_v49, %v360_v50  ;;  %v483_v52 = vpop.f32.mrb[5].mxu0 }
 0x2d4   :  { %v363_v53 = vpop.f32.mrb[6].mxu0 }
 0x2d5   :  { %366 = vmax.xlane.f32.xlu0 %v361_v51  ;;  %v484_v54 = vpop.f32.mrb[7].mxu0 }
 0x362   :  { %v367_v55 = vpop.xlane.xlu0 %366 }
 0x363   :  { %v368_v56 = vsub.f32 %v361_v51, %v367_v55 }
 0x365   :  { %v369_v57 = vmul.f32 1.442695, %v368_v56 }
 0x367   :  { %512 = vpow2.f32 %v369_v57 }
 0x371   :  { %v513_v58 = vpop.eup %512 }
 0x372   :  { %371 = vadd.xlane.f32.xlu0 %v513_v58 }
 0x3ff   :  { %v372_v59 = vpop.xlane.xlu0 %371 }
 0x400   :  { %514 = vlog2.f32 %v372_v59 }
 0x40a   :  { %v515_v60 = vpop.eup %514 }
 0x40b   :  { %v374_v61 = vmul.f32 0.6931472, %v515_v60 }
 0x40d   :  { %v375_v62 = vsub.f32 %v368_v56, %v374_v61 }
 0x40f   :  { %376 = vst [vmem:[#allocation10] sm:$0xff] %v375_v62 }
 0x410   :  { %603 = shalt.err (!%p600_p3)
}
 0x411   :  { %s604_s13 = scalar_lea.hbm %s744_s4, 128 }
 0x412   :  { %p605_p4 = scmp.ne.s32.totalorder %s744_s4, %s604_s13  ;;  %p608_p5 = scmp.lt.u32.totalorder %s604_s13, %s744_s4 }
 0x414   :  { %p610_p6 = pnand %p608_p5, %p605_p4 }
 0x416   :  { %613 = shalt.err (!%p610_p6)
}
 0x417   :  { %386 = dma.vmem_to_hbm [thread:$0]  %s384_s10, 128, %s744_s4, [#allocation4]  }
 0x418   :  { %620 = dma.done.wait [#allocation4], 128  }
 0x419   :  { %621 = vsyncadd [#allocation4], 4294967168 }
 0x41a   :  { %390 = vsyncpa [#allocation3], 1 }
 0x41b   :  { %391 = vsyncpa [#allocation8], 1 }
 0x41c   :  { %392 = vsyncpa [#allocation4], 1 }
 0x41d   :  { %393 = vsyncpa [#allocation5], 1 }

</bundles_post_ra>
